<compile_context>
chip_gen: v6e
topology: v6e:2x2x1
jax: 0.10.0
libtpu: 0.0.40
codegen_flags: <defaults>
</compile_context>

<pallas_src>
import functools

import jax
import jax.numpy as jnp
from jax.experimental import pallas as pl
from jax.experimental.pallas import tpu as pltpu

LN_EPS = 1e-5  # torch.nn.LayerNorm default


def _ln_onepass(x, gamma, beta):
    """LayerNorm over the last axis with one-pass (fused) statistics."""
    inv_f = 1.0 / x.shape[-1]
    mu = jnp.sum(x, axis=-1, keepdims=True) * inv_f
    ex2 = jnp.sum(x * x, axis=-1, keepdims=True) * inv_f
    var = ex2 - mu * mu
    return (x - mu) * jax.lax.rsqrt(var + LN_EPS) * gamma + beta


def _dynamics_kernel(dims, hidden_ref, action_ref, vec_ref, mat_ref, out_ref):
    H, A, E, D, N = dims

    hidden = hidden_ref[...]          # (bm, H)
    action = action_ref[...]          # (bm, A)

    # Static row/col slices into the packed slabs (zero-cost at runtime).
    def vec(row, width):
        return vec_ref[row:row + 1, :width]

    r = 0
    w_act = mat_ref[r:r + A, :E]; r += A        # act_linear1.weight.T
    w1_h = mat_ref[r:r + H, :D]; r += H         # dyn_net_1.weight.T[:H]
    w1_a = mat_ref[r:r + E, :D]; r += E         # dyn_net_1.weight.T[H:]
    w2 = mat_ref[r:r + D, :H]; r += D           # dyn_net_2.weight.T

    # act_emb = relu(LN(Linear(action)))
    act_emb = jnp.dot(action, w_act, preferred_element_type=jnp.float32) + vec(0, E)
    act_emb = _ln_onepass(act_emb, vec(1, E), vec(2, E))
    act_emb = jnp.maximum(act_emb, 0.0)

    # dyn_ln_1 over the (virtual) concat [hidden, act_emb] -- no lane concat:
    # combine per-half sums to get shared mu / var, normalise halves in place.
    inv_f = 1.0 / float(H + E)
    s = (jnp.sum(hidden, axis=-1, keepdims=True)
         + jnp.sum(act_emb, axis=-1, keepdims=True))
    sq = (jnp.sum(hidden * hidden, axis=-1, keepdims=True)
          + jnp.sum(act_emb * act_emb, axis=-1, keepdims=True))
    mu = s * inv_f
    var = sq * inv_f - mu * mu
    inv_std = jax.lax.rsqrt(var + LN_EPS)
    h_ln = (hidden - mu) * inv_std * vec(3, H) + vec(5, H)
    a_ln = (act_emb - mu) * inv_std * vec(4, E) + vec(6, E)

    # dyn_net_1 (split matmul) -> relu -> dyn_net_2
    x = (jnp.dot(h_ln, w1_h, preferred_element_type=jnp.float32)
         + jnp.dot(a_ln, w1_a, preferred_element_type=jnp.float32)
         + vec(7, D))
    x = jnp.maximum(x, 0.0)
    x = jnp.dot(x, w2, preferred_element_type=jnp.float32) + vec(8, H)

    state = hidden + x

    # ImproveResidualBlock stack.  num_blocks is small & static here; iterations
    # are serially dependent, so a static unroll is fine.
    # TODO(synk): for num_blocks >= 8 switch to lax.fori_loop / a grid axis to
    # bound vreg live ranges and stream rb weights (v7x 64 MiB VMEM).
    for i in range(N):
        rb_w1 = mat_ref[r:r + H, :D]; r += H
        rb_w2 = mat_ref[r:r + D, :H]; r += D
        base = 9 + 4 * i
        out = _ln_onepass(state, vec(base + 0, H), vec(base + 1, H))
        out = jnp.dot(out, rb_w1, preferred_element_type=jnp.float32) + vec(base + 2, D)
        out = jnp.maximum(out, 0.0)
        out = jnp.dot(out, rb_w2, preferred_element_type=jnp.float32) + vec(base + 3, H)
        state = state + out

    out_ref[...] = state


def pack_params(p, hidden_shape, action_shape, dyn_shape, act_embed_shape,
                num_blocks):
    """Pack the individual parameter arrays into two flat f32 slabs."""
    H, A, E, D, N = hidden_shape, action_shape, act_embed_shape, dyn_shape, num_blocks
    w_max = max(H, E, D)

    def row(v):
        v = jnp.asarray(v, jnp.float32).reshape(-1)
        return jnp.pad(v, (0, w_max - v.shape[0]))

    vec_rows = [
        row(p["b_act"]), row(p["g_act"]), row(p["bt_act"]),
        row(p["g_ln1"][:, :H]), row(p["g_ln1"][:, H:]),
        row(p["bt_ln1"][:, :H]), row(p["bt_ln1"][:, H:]),
        row(p["b1"]), row(p["b2"]),
    ]
    for i in range(N):
        vec_rows += [row(p["rb_g"][i]), row(p["rb_bt"][i]),
                     row(p["rb_b1"][i]), row(p["rb_b2"][i])]
    vec_slab = jnp.stack(vec_rows, axis=0)                      # (9 + 4N, w_max)

    def mat(m):
        m = jnp.asarray(m, jnp.float32)
        return jnp.pad(m, ((0, 0), (0, w_max - m.shape[1])))

    mats = [mat(p["w_act"]), mat(p["w1"][:H]), mat(p["w1"][H:]), mat(p["w2"])]
    for i in range(N):
        mats += [mat(p["rb_w1"][i]), mat(p["rb_w2"][i])]
    mat_slab = jnp.concatenate(mats, axis=0)                    # (A+H+E+D+N(H+D), w_max)
    return vec_slab, mat_slab


def dynamics_forward(hidden, action, vec_slab, mat_slab, dims, *, block_batch=None):
    """Pallas wrapper. hidden: [B, H], action: [B, A] -> state: [B, H]."""
    H, A, E, D, N = dims
    B = hidden.shape[0]
    bm = B if block_batch is None else block_batch
    bm = min(bm, B)
    assert B % bm == 0, "batch must be divisible by the batch tile"

    grid = (B // bm,)
    return pl.pallas_call(
        functools.partial(_dynamics_kernel, dims),
        out_shape=jax.ShapeDtypeStruct((B, H), jnp.float32),
        grid_spec=pltpu.PrefetchScalarGridSpec(
            num_scalar_prefetch=0,
            grid=grid,
            in_specs=[
                pl.BlockSpec((bm, H), lambda b: (b, 0)),
                pl.BlockSpec((bm, A), lambda b: (b, 0)),
                # Parameter slabs: constant index_map -> DMA'd once, resident
                # across all batch-grid steps.
                pl.BlockSpec(vec_slab.shape, lambda b: (0, 0)),
                pl.BlockSpec(mat_slab.shape, lambda b: (0, 0)),
            ],
            out_specs=pl.BlockSpec((bm, H), lambda b: (b, 0)),
        ),
        compiler_params=pltpu.CompilerParams(
            dimension_semantics=("parallel",)),   # shards batch over v7x's 2 TCs
    )(hidden, action, vec_slab, mat_slab)


def make_params(key, hidden_shape, action_shape, dyn_shape, act_embed_shape,
                num_blocks):
    """Deterministic synthetic parameters (shapes follow DynamicsNetwork.__init__)."""
    ks = jax.random.split(key, 16)
    cat = hidden_shape + act_embed_shape
    scale = 0.1

    def w(k, shape):
        return scale * jax.random.normal(k, shape, dtype=jnp.float32)

    params = {
        # act_linear1: Linear(action_shape -> act_embed_shape), stored [in, out]
        "w_act": w(ks[0], (action_shape, act_embed_shape)),
        "b_act": w(ks[1], (1, act_embed_shape)),
        # act_ln1
        "g_act": 1.0 + w(ks[2], (1, act_embed_shape)),
        "bt_act": w(ks[3], (1, act_embed_shape)),
        # dyn_ln_1 over hidden + act_embed
        "g_ln1": 1.0 + w(ks[4], (1, cat)),
        "bt_ln1": w(ks[5], (1, cat)),
        # dyn_net_1: Linear(cat -> dyn_shape)
        "w1": w(ks[6], (cat, dyn_shape)),
        "b1": w(ks[7], (1, dyn_shape)),
        # dyn_net_2: Linear(dyn_shape -> hidden_shape)
        "w2": w(ks[8], (dyn_shape, hidden_shape)),
        "b2": w(ks[9], (1, hidden_shape)),
        # ImproveResidualBlock params, stacked over num_blocks
        "rb_g": 1.0 + w(ks[10], (num_blocks, hidden_shape)),
        "rb_bt": w(ks[11], (num_blocks, hidden_shape)),
        "rb_w1": w(ks[12], (num_blocks, hidden_shape, dyn_shape)),
        "rb_b1": w(ks[13], (num_blocks, dyn_shape)),
        "rb_w2": w(ks[14], (num_blocks, dyn_shape, hidden_shape)),
        "rb_b2": w(ks[15], (num_blocks, hidden_shape)),
    }
    # NOTE: dyn_ln_2 is defined in __init__ but never used in forward(), so it
    # is intentionally omitted.
    return params


def dynamics_forward_ref(hidden, action, params, num_blocks):
    """Pure-JAX reference mirroring the PyTorch forward (two-pass LN + concat)."""
    def ln(x, g, b):
        mu = jnp.mean(x, axis=-1, keepdims=True)
        var = jnp.mean((x - mu) ** 2, axis=-1, keepdims=True)
        return (x - mu) * jax.lax.rsqrt(var + LN_EPS) * g + b

    act_emb = action @ params["w_act"] + params["b_act"]
    act_emb = jnp.maximum(ln(act_emb, params["g_act"], params["bt_act"]), 0.0)
    x = jnp.concatenate([hidden, act_emb], axis=-1)
    x = ln(x, params["g_ln1"], params["bt_ln1"])
    x = jnp.maximum(x @ params["w1"] + params["b1"], 0.0)
    x = x @ params["w2"] + params["b2"]
    state = hidden + x
    for i in range(num_blocks):
        out = ln(state, params["rb_g"][i:i + 1], params["rb_bt"][i:i + 1])
        out = jnp.maximum(out @ params["rb_w1"][i] + params["rb_b1"][i:i + 1], 0.0)
        out = out @ params["rb_w2"][i] + params["rb_b2"][i:i + 1]
        state = state + out
    return state


if __name__ == "__main__":
    # Small shapes consistent with the module's forward.
    batch = 8
    hidden_shape = 32
    action_shape = 8
    act_embed_shape = 16
    dyn_shape = 64
    num_blocks = 2
    dims = (hidden_shape, action_shape, act_embed_shape, dyn_shape, num_blocks)

    key = jax.random.PRNGKey(0)
    k_h, k_a, k_p = jax.random.split(key, 3)
    hidden = jax.random.normal(k_h, (batch, hidden_shape), dtype=jnp.float32)
    action = jax.random.normal(k_a, (batch, action_shape), dtype=jnp.float32)
    params = make_params(k_p, hidden_shape, action_shape, dyn_shape,
                         act_embed_shape, num_blocks)
    vec_slab, mat_slab = pack_params(params, hidden_shape, action_shape,
                                     dyn_shape, act_embed_shape, num_blocks)

    out = dynamics_forward(hidden, action, vec_slab, mat_slab, dims)
    out = jax.block_until_ready(out)

    ref = dynamics_forward_ref(hidden, action, params, num_blocks)
    assert out.shape == (batch, hidden_shape)
    # Tolerance covers default-precision MXU matmuls and one-pass LN statistics.
    assert jnp.allclose(out, ref, atol=1e-4, rtol=1e-4), "mismatch vs reference"

    print("KERNEL_OK")
</pallas_src>

<mosaic_0001>
module attributes {stable_mosaic.version = 11 : i64} {
  func.func @_dynamics_kernel(%arg0: i32, %arg1: memref<8x32xf32, #tpu.memory_space<vmem>>, %arg2: memref<8x8xf32, #tpu.memory_space<vmem>>, %arg3: memref<17x64xf32, #tpu.memory_space<vmem>>, %arg4: memref<312x64xf32, #tpu.memory_space<vmem>>, %arg5: memref<8x32xf32, #tpu.memory_space<vmem>>) attributes {dimension_semantics = [#tpu.dimension_semantics<parallel>], iteration_bounds = array<i64: 1>, scalar_prefetch = 0 : i64, scratch_operands = 0 : i64, tpu.core_type = #tpu.core_type<tc>, window_params = [{transform_indices = @transform_0, window_bounds = array<i64: 8, 32>}, {transform_indices = @transform_1, window_bounds = array<i64: 8, 8>}, {pipeline_mode = #tpu.pipeline_mode<synchronous>, transform_indices = @transform_2, window_bounds = array<i64: 17, 64>}, {pipeline_mode = #tpu.pipeline_mode<synchronous>, transform_indices = @transform_3, window_bounds = array<i64: 312, 64>}, {transform_indices = @transform_4, window_bounds = array<i64: 8, 32>}]} {
    %c0 = arith.constant 0 : index
    %c0_0 = arith.constant 0 : index
    %0 = vector.load %arg1[%c0, %c0_0] : memref<8x32xf32, #tpu.memory_space<vmem>>, vector<8x32xf32>
    %c0_1 = arith.constant 0 : index
    %c0_2 = arith.constant 0 : index
    %1 = vector.load %arg2[%c0_1, %c0_2] : memref<8x8xf32, #tpu.memory_space<vmem>>, vector<8x8xf32>
    %c0_3 = arith.constant 0 : index
    %c0_4 = arith.constant 0 : index
    %2 = vector.load %arg4[%c0_3, %c0_4] : memref<312x64xf32, #tpu.memory_space<vmem>>, vector<8x16xf32>
    %c8 = arith.constant 8 : index
    %c0_5 = arith.constant 0 : index
    %3 = vector.load %arg4[%c8, %c0_5] : memref<312x64xf32, #tpu.memory_space<vmem>>, vector<32x64xf32>
    %c40 = arith.constant 40 : index
    %c0_6 = arith.constant 0 : index
    %4 = vector.load %arg4[%c40, %c0_6] : memref<312x64xf32, #tpu.memory_space<vmem>>, vector<16x64xf32>
    %c56 = arith.constant 56 : index
    %c0_7 = arith.constant 0 : index
    %5 = vector.load %arg4[%c56, %c0_7] : memref<312x64xf32, #tpu.memory_space<vmem>>, vector<64x32xf32>
    %cst = arith.constant dense<0.000000e+00> : vector<8x16xf32>
    %6 = tpu.matmul %1, %2, %cst {dimension_numbers = #tpu.dot_dimension_numbers<[1], [0], [0], [1], [0, 0, 1, 1], [], []>} : vector<8x8xf32>, vector<8x16xf32>, vector<8x16xf32> -> vector<8x16xf32>
    %c0_8 = arith.constant 0 : index
    %c0_9 = arith.constant 0 : index
    %7 = vector.load %arg3[%c0_8, %c0_9] : memref<17x64xf32, #tpu.memory_space<vmem>>, vector<1x16xf32>
    %8 = vector.broadcast %7 : vector<1x16xf32> to vector<8x16xf32>
    %9 = arith.addf %6, %8 : vector<8x16xf32>
    %c1 = arith.constant 1 : index
    %c0_10 = arith.constant 0 : index
    %10 = vector.load %arg3[%c1, %c0_10] : memref<17x64xf32, #tpu.memory_space<vmem>>, vector<1x16xf32>
    %c2 = arith.constant 2 : index
    %c0_11 = arith.constant 0 : index
    %11 = vector.load %arg3[%c2, %c0_11] : memref<17x64xf32, #tpu.memory_space<vmem>>, vector<1x16xf32>
    %cst_12 = arith.constant dense<0.000000e+00> : vector<8xf32>
    %12 = vector.multi_reduction <add>, %9, %cst_12 [1] : vector<8x16xf32> to vector<8xf32>
    %13 = vector.shape_cast %12 : vector<8xf32> to vector<8x1xf32>
    %cst_13 = arith.constant 6.250000e-02 : f32
    %14 = vector.broadcast %cst_13 : f32 to vector<8x1xf32>
    %15 = arith.mulf %13, %14 : vector<8x1xf32>
    %16 = arith.mulf %9, %9 : vector<8x16xf32>
    %cst_14 = arith.constant dense<0.000000e+00> : vector<8xf32>
    %17 = vector.multi_reduction <add>, %16, %cst_14 [1] : vector<8x16xf32> to vector<8xf32>
    %18 = vector.shape_cast %17 : vector<8xf32> to vector<8x1xf32>
    %cst_15 = arith.constant 6.250000e-02 : f32
    %19 = vector.broadcast %cst_15 : f32 to vector<8x1xf32>
    %20 = arith.mulf %18, %19 : vector<8x1xf32>
    %21 = arith.mulf %15, %15 : vector<8x1xf32>
    %22 = arith.subf %20, %21 : vector<8x1xf32>
    %23 = vector.broadcast %15 : vector<8x1xf32> to vector<8x16xf32>
    %24 = arith.subf %9, %23 : vector<8x16xf32>
    %cst_16 = arith.constant 9.99999974E-6 : f32
    %25 = vector.broadcast %cst_16 : f32 to vector<8x1xf32>
    %26 = arith.addf %22, %25 : vector<8x1xf32>
    %27 = math.rsqrt %26 : vector<8x1xf32>
    %28 = vector.broadcast %27 : vector<8x1xf32> to vector<8x16xf32>
    %29 = arith.mulf %24, %28 : vector<8x16xf32>
    %30 = vector.broadcast %10 : vector<1x16xf32> to vector<8x16xf32>
    %31 = arith.mulf %29, %30 : vector<8x16xf32>
    %32 = vector.broadcast %11 : vector<1x16xf32> to vector<8x16xf32>
    %33 = arith.addf %31, %32 : vector<8x16xf32>
    %cst_17 = arith.constant 0.000000e+00 : f32
    %34 = vector.broadcast %cst_17 : f32 to vector<8x16xf32>
    %35 = arith.maximumf %33, %34 : vector<8x16xf32>
    %cst_18 = arith.constant dense<0.000000e+00> : vector<8xf32>
    %36 = vector.multi_reduction <add>, %0, %cst_18 [1] : vector<8x32xf32> to vector<8xf32>
    %37 = vector.shape_cast %36 : vector<8xf32> to vector<8x1xf32>
    %cst_19 = arith.constant dense<0.000000e+00> : vector<8xf32>
    %38 = vector.multi_reduction <add>, %35, %cst_19 [1] : vector<8x16xf32> to vector<8xf32>
    %39 = vector.shape_cast %38 : vector<8xf32> to vector<8x1xf32>
    %40 = arith.addf %37, %39 : vector<8x1xf32>
    %41 = arith.mulf %0, %0 : vector<8x32xf32>
    %cst_20 = arith.constant dense<0.000000e+00> : vector<8xf32>
    %42 = vector.multi_reduction <add>, %41, %cst_20 [1] : vector<8x32xf32> to vector<8xf32>
    %43 = vector.shape_cast %42 : vector<8xf32> to vector<8x1xf32>
    %44 = arith.mulf %35, %35 : vector<8x16xf32>
    %cst_21 = arith.constant dense<0.000000e+00> : vector<8xf32>
    %45 = vector.multi_reduction <add>, %44, %cst_21 [1] : vector<8x16xf32> to vector<8xf32>
    %46 = vector.shape_cast %45 : vector<8xf32> to vector<8x1xf32>
    %47 = arith.addf %43, %46 : vector<8x1xf32>
    %cst_22 = arith.constant 0.020833334 : f32
    %48 = vector.broadcast %cst_22 : f32 to vector<8x1xf32>
    %49 = arith.mulf %40, %48 : vector<8x1xf32>
    %cst_23 = arith.constant 0.020833334 : f32
    %50 = vector.broadcast %cst_23 : f32 to vector<8x1xf32>
    %51 = arith.mulf %47, %50 : vector<8x1xf32>
    %52 = arith.mulf %49, %49 : vector<8x1xf32>
    %53 = arith.subf %51, %52 : vector<8x1xf32>
    %cst_24 = arith.constant 9.99999974E-6 : f32
    %54 = vector.broadcast %cst_24 : f32 to vector<8x1xf32>
    %55 = arith.addf %53, %54 : vector<8x1xf32>
    %56 = math.rsqrt %55 : vector<8x1xf32>
    %57 = vector.broadcast %49 : vector<8x1xf32> to vector<8x32xf32>
    %58 = arith.subf %0, %57 : vector<8x32xf32>
    %59 = vector.broadcast %56 : vector<8x1xf32> to vector<8x32xf32>
    %60 = arith.mulf %58, %59 : vector<8x32xf32>
    %c3 = arith.constant 3 : index
    %c0_25 = arith.constant 0 : index
    %61 = vector.load %arg3[%c3, %c0_25] : memref<17x64xf32, #tpu.memory_space<vmem>>, vector<1x32xf32>
    %62 = vector.broadcast %61 : vector<1x32xf32> to vector<8x32xf32>
    %63 = arith.mulf %60, %62 : vector<8x32xf32>
    %c5 = arith.constant 5 : index
    %c0_26 = arith.constant 0 : index
    %64 = vector.load %arg3[%c5, %c0_26] : memref<17x64xf32, #tpu.memory_space<vmem>>, vector<1x32xf32>
    %65 = vector.broadcast %64 : vector<1x32xf32> to vector<8x32xf32>
    %66 = arith.addf %63, %65 : vector<8x32xf32>
    %67 = vector.broadcast %49 : vector<8x1xf32> to vector<8x16xf32>
    %68 = arith.subf %35, %67 : vector<8x16xf32>
    %69 = vector.broadcast %56 : vector<8x1xf32> to vector<8x16xf32>
    %70 = arith.mulf %68, %69 : vector<8x16xf32>
    %c4 = arith.constant 4 : index
    %c0_27 = arith.constant 0 : index
    %71 = vector.load %arg3[%c4, %c0_27] : memref<17x64xf32, #tpu.memory_space<vmem>>, vector<1x16xf32>
    %72 = vector.broadcast %71 : vector<1x16xf32> to vector<8x16xf32>
    %73 = arith.mulf %70, %72 : vector<8x16xf32>
    %c6 = arith.constant 6 : index
    %c0_28 = arith.constant 0 : index
    %74 = vector.load %arg3[%c6, %c0_28] : memref<17x64xf32, #tpu.memory_space<vmem>>, vector<1x16xf32>
    %75 = vector.broadcast %74 : vector<1x16xf32> to vector<8x16xf32>
    %76 = arith.addf %73, %75 : vector<8x16xf32>
    %cst_29 = arith.constant dense<0.000000e+00> : vector<8x64xf32>
    %77 = tpu.matmul %66, %3, %cst_29 {dimension_numbers = #tpu.dot_dimension_numbers<[1], [0], [0], [1], [0, 0, 1, 1], [], []>} : vector<8x32xf32>, vector<32x64xf32>, vector<8x64xf32> -> vector<8x64xf32>
    %cst_30 = arith.constant dense<0.000000e+00> : vector<8x64xf32>
    %78 = tpu.matmul %76, %4, %cst_30 {dimension_numbers = #tpu.dot_dimension_numbers<[1], [0], [0], [1], [0, 0, 1, 1], [], []>} : vector<8x16xf32>, vector<16x64xf32>, vector<8x64xf32> -> vector<8x64xf32>
    %79 = arith.addf %77, %78 : vector<8x64xf32>
    %c7 = arith.constant 7 : index
    %c0_31 = arith.constant 0 : index
    %80 = vector.load %arg3[%c7, %c0_31] : memref<17x64xf32, #tpu.memory_space<vmem>>, vector<1x64xf32>
    %81 = vector.broadcast %80 : vector<1x64xf32> to vector<8x64xf32>
    %82 = arith.addf %79, %81 : vector<8x64xf32>
    %cst_32 = arith.constant 0.000000e+00 : f32
    %83 = vector.broadcast %cst_32 : f32 to vector<8x64xf32>
    %84 = arith.maximumf %82, %83 : vector<8x64xf32>
    %cst_33 = arith.constant dense<0.000000e+00> : vector<8x32xf32>
    %85 = tpu.matmul %84, %5, %cst_33 {dimension_numbers = #tpu.dot_dimension_numbers<[1], [0], [0], [1], [0, 0, 1, 1], [], []>} : vector<8x64xf32>, vector<64x32xf32>, vector<8x32xf32> -> vector<8x32xf32>
    %c8_34 = arith.constant 8 : index
    %c0_35 = arith.constant 0 : index
    %86 = vector.load %arg3[%c8_34, %c0_35] : memref<17x64xf32, #tpu.memory_space<vmem>>, vector<1x32xf32>
    %87 = vector.broadcast %86 : vector<1x32xf32> to vector<8x32xf32>
    %88 = arith.addf %85, %87 : vector<8x32xf32>
    %89 = arith.addf %0, %88 : vector<8x32xf32>
    %c120 = arith.constant 120 : index
    %c0_36 = arith.constant 0 : index
    %90 = vector.load %arg4[%c120, %c0_36] : memref<312x64xf32, #tpu.memory_space<vmem>>, vector<32x64xf32>
    %c152 = arith.constant 152 : index
    %c0_37 = arith.constant 0 : index
    %91 = vector.load %arg4[%c152, %c0_37] : memref<312x64xf32, #tpu.memory_space<vmem>>, vector<64x32xf32>
    %c9 = arith.constant 9 : index
    %c0_38 = arith.constant 0 : index
    %92 = vector.load %arg3[%c9, %c0_38] : memref<17x64xf32, #tpu.memory_space<vmem>>, vector<1x32xf32>
    %c10 = arith.constant 10 : index
    %c0_39 = arith.constant 0 : index
    %93 = vector.load %arg3[%c10, %c0_39] : memref<17x64xf32, #tpu.memory_space<vmem>>, vector<1x32xf32>
    %cst_40 = arith.constant dense<0.000000e+00> : vector<8xf32>
    %94 = vector.multi_reduction <add>, %89, %cst_40 [1] : vector<8x32xf32> to vector<8xf32>
    %95 = vector.shape_cast %94 : vector<8xf32> to vector<8x1xf32>
    %cst_41 = arith.constant 3.125000e-02 : f32
    %96 = vector.broadcast %cst_41 : f32 to vector<8x1xf32>
    %97 = arith.mulf %95, %96 : vector<8x1xf32>
    %98 = arith.mulf %89, %89 : vector<8x32xf32>
    %cst_42 = arith.constant dense<0.000000e+00> : vector<8xf32>
    %99 = vector.multi_reduction <add>, %98, %cst_42 [1] : vector<8x32xf32> to vector<8xf32>
    %100 = vector.shape_cast %99 : vector<8xf32> to vector<8x1xf32>
    %cst_43 = arith.constant 3.125000e-02 : f32
    %101 = vector.broadcast %cst_43 : f32 to vector<8x1xf32>
    %102 = arith.mulf %100, %101 : vector<8x1xf32>
    %103 = arith.mulf %97, %97 : vector<8x1xf32>
    %104 = arith.subf %102, %103 : vector<8x1xf32>
    %105 = vector.broadcast %97 : vector<8x1xf32> to vector<8x32xf32>
    %106 = arith.subf %89, %105 : vector<8x32xf32>
    %cst_44 = arith.constant 9.99999974E-6 : f32
    %107 = vector.broadcast %cst_44 : f32 to vector<8x1xf32>
    %108 = arith.addf %104, %107 : vector<8x1xf32>
    %109 = math.rsqrt %108 : vector<8x1xf32>
    %110 = vector.broadcast %109 : vector<8x1xf32> to vector<8x32xf32>
    %111 = arith.mulf %106, %110 : vector<8x32xf32>
    %112 = vector.broadcast %92 : vector<1x32xf32> to vector<8x32xf32>
    %113 = arith.mulf %111, %112 : vector<8x32xf32>
    %114 = vector.broadcast %93 : vector<1x32xf32> to vector<8x32xf32>
    %115 = arith.addf %113, %114 : vector<8x32xf32>
    %cst_45 = arith.constant dense<0.000000e+00> : vector<8x64xf32>
    %116 = tpu.matmul %115, %90, %cst_45 {dimension_numbers = #tpu.dot_dimension_numbers<[1], [0], [0], [1], [0, 0, 1, 1], [], []>} : vector<8x32xf32>, vector<32x64xf32>, vector<8x64xf32> -> vector<8x64xf32>
    %c11 = arith.constant 11 : index
    %c0_46 = arith.constant 0 : index
    %117 = vector.load %arg3[%c11, %c0_46] : memref<17x64xf32, #tpu.memory_space<vmem>>, vector<1x64xf32>
    %118 = vector.broadcast %117 : vector<1x64xf32> to vector<8x64xf32>
    %119 = arith.addf %116, %118 : vector<8x64xf32>
    %cst_47 = arith.constant 0.000000e+00 : f32
    %120 = vector.broadcast %cst_47 : f32 to vector<8x64xf32>
    %121 = arith.maximumf %119, %120 : vector<8x64xf32>
    %cst_48 = arith.constant dense<0.000000e+00> : vector<8x32xf32>
    %122 = tpu.matmul %121, %91, %cst_48 {dimension_numbers = #tpu.dot_dimension_numbers<[1], [0], [0], [1], [0, 0, 1, 1], [], []>} : vector<8x64xf32>, vector<64x32xf32>, vector<8x32xf32> -> vector<8x32xf32>
    %c12 = arith.constant 12 : index
    %c0_49 = arith.constant 0 : index
    %123 = vector.load %arg3[%c12, %c0_49] : memref<17x64xf32, #tpu.memory_space<vmem>>, vector<1x32xf32>
    %124 = vector.broadcast %123 : vector<1x32xf32> to vector<8x32xf32>
    %125 = arith.addf %122, %124 : vector<8x32xf32>
    %126 = arith.addf %89, %125 : vector<8x32xf32>
    %c216 = arith.constant 216 : index
    %c0_50 = arith.constant 0 : index
    %127 = vector.load %arg4[%c216, %c0_50] : memref<312x64xf32, #tpu.memory_space<vmem>>, vector<32x64xf32>
    %c248 = arith.constant 248 : index
    %c0_51 = arith.constant 0 : index
    %128 = vector.load %arg4[%c248, %c0_51] : memref<312x64xf32, #tpu.memory_space<vmem>>, vector<64x32xf32>
    %c13 = arith.constant 13 : index
    %c0_52 = arith.constant 0 : index
    %129 = vector.load %arg3[%c13, %c0_52] : memref<17x64xf32, #tpu.memory_space<vmem>>, vector<1x32xf32>
    %c14 = arith.constant 14 : index
    %c0_53 = arith.constant 0 : index
    %130 = vector.load %arg3[%c14, %c0_53] : memref<17x64xf32, #tpu.memory_space<vmem>>, vector<1x32xf32>
    %cst_54 = arith.constant dense<0.000000e+00> : vector<8xf32>
    %131 = vector.multi_reduction <add>, %126, %cst_54 [1] : vector<8x32xf32> to vector<8xf32>
    %132 = vector.shape_cast %131 : vector<8xf32> to vector<8x1xf32>
    %cst_55 = arith.constant 3.125000e-02 : f32
    %133 = vector.broadcast %cst_55 : f32 to vector<8x1xf32>
    %134 = arith.mulf %132, %133 : vector<8x1xf32>
    %135 = arith.mulf %126, %126 : vector<8x32xf32>
    %cst_56 = arith.constant dense<0.000000e+00> : vector<8xf32>
    %136 = vector.multi_reduction <add>, %135, %cst_56 [1] : vector<8x32xf32> to vector<8xf32>
    %137 = vector.shape_cast %136 : vector<8xf32> to vector<8x1xf32>
    %cst_57 = arith.constant 3.125000e-02 : f32
    %138 = vector.broadcast %cst_57 : f32 to vector<8x1xf32>
    %139 = arith.mulf %137, %138 : vector<8x1xf32>
    %140 = arith.mulf %134, %134 : vector<8x1xf32>
    %141 = arith.subf %139, %140 : vector<8x1xf32>
    %142 = vector.broadcast %134 : vector<8x1xf32> to vector<8x32xf32>
    %143 = arith.subf %126, %142 : vector<8x32xf32>
    %cst_58 = arith.constant 9.99999974E-6 : f32
    %144 = vector.broadcast %cst_58 : f32 to vector<8x1xf32>
    %145 = arith.addf %141, %144 : vector<8x1xf32>
    %146 = math.rsqrt %145 : vector<8x1xf32>
    %147 = vector.broadcast %146 : vector<8x1xf32> to vector<8x32xf32>
    %148 = arith.mulf %143, %147 : vector<8x32xf32>
    %149 = vector.broadcast %129 : vector<1x32xf32> to vector<8x32xf32>
    %150 = arith.mulf %148, %149 : vector<8x32xf32>
    %151 = vector.broadcast %130 : vector<1x32xf32> to vector<8x32xf32>
    %152 = arith.addf %150, %151 : vector<8x32xf32>
    %cst_59 = arith.constant dense<0.000000e+00> : vector<8x64xf32>
    %153 = tpu.matmul %152, %127, %cst_59 {dimension_numbers = #tpu.dot_dimension_numbers<[1], [0], [0], [1], [0, 0, 1, 1], [], []>} : vector<8x32xf32>, vector<32x64xf32>, vector<8x64xf32> -> vector<8x64xf32>
    %c15 = arith.constant 15 : index
    %c0_60 = arith.constant 0 : index
    %154 = vector.load %arg3[%c15, %c0_60] : memref<17x64xf32, #tpu.memory_space<vmem>>, vector<1x64xf32>
    %155 = vector.broadcast %154 : vector<1x64xf32> to vector<8x64xf32>
    %156 = arith.addf %153, %155 : vector<8x64xf32>
    %cst_61 = arith.constant 0.000000e+00 : f32
    %157 = vector.broadcast %cst_61 : f32 to vector<8x64xf32>
    %158 = arith.maximumf %156, %157 : vector<8x64xf32>
    %cst_62 = arith.constant dense<0.000000e+00> : vector<8x32xf32>
    %159 = tpu.matmul %158, %128, %cst_62 {dimension_numbers = #tpu.dot_dimension_numbers<[1], [0], [0], [1], [0, 0, 1, 1], [], []>} : vector<8x64xf32>, vector<64x32xf32>, vector<8x32xf32> -> vector<8x32xf32>
    %c16 = arith.constant 16 : index
    %c0_63 = arith.constant 0 : index
    %160 = vector.load %arg3[%c16, %c0_63] : memref<17x64xf32, #tpu.memory_space<vmem>>, vector<1x32xf32>
    %161 = vector.broadcast %160 : vector<1x32xf32> to vector<8x32xf32>
    %162 = arith.addf %159, %161 : vector<8x32xf32>
    %163 = arith.addf %126, %162 : vector<8x32xf32>
    %c0_64 = arith.constant 0 : index
    %c0_65 = arith.constant 0 : index
    %164 = vector.load %arg5[%c0_64, %c0_65] : memref<8x32xf32, #tpu.memory_space<vmem>>, vector<8x32xf32>
    tpu.vector_store %arg5[%c0_64, %c0_65], %163 {strides = array<i32>} : memref<8x32xf32, #tpu.memory_space<vmem>>, vector<8x32xf32>,
    return
  }
  func.func @transform_0(%arg0: i32) -> (i32, i32) {
    %c0_i32 = arith.constant 0 : i32
    %c0_i32_0 = arith.constant 0 : i32
    return %arg0, %c0_i32 : i32, i32
  }
  func.func @transform_1(%arg0: i32) -> (i32, i32) {
    %c0_i32 = arith.constant 0 : i32
    %c0_i32_0 = arith.constant 0 : i32
    return %arg0, %c0_i32 : i32, i32
  }
  func.func @transform_2(%arg0: i32) -> (i32, i32) {
    %c0_i32 = arith.constant 0 : i32
    %c0_i32_0 = arith.constant 0 : i32
    %c0_i32_1 = arith.constant 0 : i32
    return %c0_i32, %c0_i32_0 : i32, i32
  }
  func.func @transform_3(%arg0: i32) -> (i32, i32) {
    %c0_i32 = arith.constant 0 : i32
    %c0_i32_0 = arith.constant 0 : i32
    %c0_i32_1 = arith.constant 0 : i32
    return %c0_i32, %c0_i32_0 : i32, i32
  }
  func.func @transform_4(%arg0: i32) -> (i32, i32) {
    %c0_i32 = arith.constant 0 : i32
    %c0_i32_0 = arith.constant 0 : i32
    return %arg0, %c0_i32 : i32, i32
  }
}

</mosaic_0001>

<bundles_post_ra>
// kernel: tpu_custom_call.1
= control target key start
LH: loop header
LB: loop body
LE: loop exit
PB: predicated region body
PF: predicated region fallthrough
CT: control target
= control target key end

     0   :  { %vm40_vm0 = vcmask 64512   ;;  %v1043_v2 = vmov 0.0   ;;  %vm1044_vm1 = vmmov 0   ;;  %s1342_s0 = inlined_call_operand.vmem [shape: f32[8,32], index: 0, kind: input, shape index: {}]   ;;  %s1343_s1 = inlined_call_operand.vmem [shape: f32[8,8], index: 1, kind: input, shape index: {}]   ;;  %s1344_s2 = inlined_call_operand.vmem [shape: f32[17,64], index: 2, kind: input, shape index: {}]   ;;  %s1345_s3 = inlined_call_operand.vmem [shape: f32[312,64], index: 3, kind: input, shape index: {}]   ;;  %s1346_s4 = inlined_call_operand.hbm [shape: f32[8,32], index: 4, kind: output, shape index: {}]  }
   0x1   :  { %v20_v0 = vld [vmem:[%s1345_s3] sm:$0xff]  ;;  %908 = vmatprep.subr.mxu0 %v1043_v2  ;;  %910 = vmatprep.mubr.msk.f32.mxu0 %vm1044_vm1, %v1043_v2 }
   0x2   :  { %v19_v1 = vld [vmem:[%s1343_s1] sm:$0xff] }
   0x3   :  { %9 = vsyncpa [#allocation3], 0  ;;  %909 = vmatpush3.msra.mxu0 %v20_v0  ;;  %931 = vmatprep.subr.mxu1 %v1043_v2  ;;  %v836_v3 = vld [vmem:[%s1344_s2] ss:$0 sm:$0xff]  ;;  %vm116_vm2 = vcmask 130048   ;;  %vm143_vm3 = vcmask 261120  }
   0x4   :  { %911 = vmatmul.mubr.msk.f32.vlgmr.msra.gmra.mxu0 %vm40_vm0, %v19_v1  ;;  %913 = vmatprep.subr.mxu0 %v1043_v2  ;;  %v1094_v10 = vld [vmem:[%s1342_s0] sm:$0xff]  ;;  %v26_v32 = vld [vmem:[%s1345_s3 + $0x30] sm:$0xff]  ;;  %v25_v33 = vld [vmem:[%s1345_s3 + $0x28] sm:$0xff]  ;;  %vm352_vm4 = vcmask 523264   ;;  %s1045_s1 = smov [#allocation2]  }
   0x5   :  { %917 = vmatprep.mubr.msk.f32.mxu0 %vm1044_vm1, %v1043_v2  ;;  %947 = vmatprep.mubr.msk.f32.mxu1 %vm1044_vm1, %v1043_v2  ;;  %v144_v11 = vsel %vm143_vm3, %v1094_v10, 0.0  ;;  %v151_v12 = vmul.f32 %v1094_v10, %v1094_v10  ;;  %v838_v23 = vld [vmem:[%s1344_s2 + $0x1] ss:$0 sm:$0xff]  ;;  %v839_v25 = vld [vmem:[%s1344_s2 + $0x2] ss:$0 sm:$0xff]  ;;  %v34_v34 = vld [vmem:[%s1345_s3 + $0x70] sm:$0xff] }
   0x6   :  { %145 = vadd.xlane.f32.xlu1 %v144_v11  ;;  %914 = vmatpush3.msra.mxu0 %v26_v32  ;;  %v842_v48 = vld [vmem:[%s1344_s2 + $0x4] ss:$0 sm:$0xff]  ;;  %v843_v50 = vld [vmem:[%s1344_s2 + $0x6] ss:$0 sm:$0xff]  ;;  %v840_v56 = vld [vmem:[%s1344_s2 + $0x3] ss:$0 sm:$0xff] }
   0x7   :  { %v152_v13 = vsel %vm143_vm3, %v151_v12, 0.0  ;;  %915 = vmatprep.subr.mxu0 %v1043_v2  ;;  %932 = vmatpush3.msra.mxu1 %v34_v34  ;;  %v24_v54 = vld [vmem:[%s1345_s3 + $0x20] sm:$0xff]  ;;  %v23_v57 = vld [vmem:[%s1345_s3 + $0x18] sm:$0xff]  ;;  %v22_v58 = vld [vmem:[%s1345_s3 + $0x10] sm:$0xff]  ;;  %s828_s19 = sshll.u32 %s1045_s1, 4  ;;  %s829_s19 = int_to_ptr.vmem [resolvable:$true] %s828_s19 }
   0x8   :  { %916 = vmatpush3.msra.mxu0 %v25_v33  ;;  %933 = vmatprep.subr.mxu1 %v1043_v2  ;;  %v841_v60 = vld [vmem:[%s1344_s2 + $0x5] ss:$0 sm:$0xff]  ;;  %v21_v61 = vld [vmem:[%s1345_s3 + $0x8] sm:$0xff]  ;;  %v31_v1 = vld [vmem:[%s1345_s3 + $0x58] sm:$0xff]  ;;  %p1026_p1 = scmp.lt.s32.totalorder %s829_s19, %s829_s19 }
   0x9   :  { %920 = vmatprep.subr.mxu0 %v1043_v2  ;;  %v33_v63 = vld [vmem:[%s1345_s3 + $0x68] sm:$0xff]  ;;  %v32_v0 = vld [vmem:[%s1345_s3 + $0x60] sm:$0xff] }
   0xa   :  { %934 = vmatpush3.msra.mxu1 %v33_v63  ;;  %v846_v11 = vld [vmem:[%s1344_s2 + $0x7] ss:$0 sm:$0xff]  ;;  %v626_v63 = vld [vmem:[%s1345_s3 + $0xe8] sm:$0xff] }
   0xb   :  { %935 = vmatprep.subr.mxu1 %v1043_v2 }
   0xc   :  { %936 = vmatpush3.msra.mxu1 %v32_v0  ;;  %v625_v0 = vld [vmem:[%s1345_s3 + $0xe0] sm:$0xff] }
   0xd   :  { %937 = vmatprep.subr.mxu1 %v1043_v2 }
   0xe   :  { %938 = vmatpush3.msra.mxu1 %v31_v1  ;;  %v624_v1 = vld [vmem:[%s1345_s3 + $0xd8] sm:$0xff] }
   0xf   :  { %939 = vmatprep.subr.mxu1 %v1043_v2 }
  0x8f   :  { %v146_v35 = vpop.xlane.xlu1 %145 }
  0xc4   :  { %v110_v4 = vpop.f32.mrf.mxu0 }
  0xc5   :  { %v111_v5 = vadd.f32 %v836_v3, %v110_v4  ;;  %v30_v3 = vld [vmem:[%s1345_s3 + $0x50] sm:$0xff]  ;;  %v29_v4 = vld [vmem:[%s1345_s3 + $0x48] sm:$0xff] }
  0xc6   :  { %v912_v6 = vpop.f32.mrf.mxu0  ;;  %940 = vmatpush3.msra.mxu1 %v30_v3 }
  0xc7   :  { %v117_v7 = vsel %vm116_vm2, %v111_v5, 0.0  ;;  %v121_v8 = vmul.f32 %v111_v5, %v111_v5  ;;  %941 = vmatprep.subr.mxu1 %v1043_v2  ;;  %v27_v6 = vld [vmem:[%s1345_s3 + $0x38] sm:$0xff] }
  0xc8   :  { %118 = vadd.xlane.f32.xlu0 %v117_v7  ;;  %942 = vmatpush3.msra.mxu1 %v29_v4 }
  0xc9   :  { %v122_v9 = vsel %vm116_vm2, %v121_v8, 0.0  ;;  %943 = vmatprep.subr.mxu1 %v1043_v2 }
  0xcc   :  { %123 = vadd.xlane.f32.xlu0 %v122_v9 }
  0xd0   :  { %153 = vadd.xlane.f32.xlu0 %v152_v13 }
 0x151   :  { %v119_v14 = vpop.xlane.xlu0 %118 }
 0x152   :  { %v120_v15 = vmul.f32 0.0625, %v119_v14 }
 0x154   :  { %v126_v17 = vmul.f32 %v120_v15, %v120_v15  ;;  %v128_v21 = vsub.f32 %v111_v5, %v120_v15  ;;  %v28_v5 = vld [vmem:[%s1345_s3 + $0x40] sm:$0xff] }
 0x155   :  { %v124_v16 = vpop.xlane.xlu0 %123  ;;  %944 = vmatpush3.msra.mxu1 %v28_v5 }
 0x156   :  { %v125_v18 = vmul.f32 0.0625, %v124_v16  ;;  %945 = vmatprep.subr.mxu1 %v1043_v2  ;;  %v847_v16 = vld [vmem:[%s1344_s2 + $0x8] ss:$0 sm:$0xff] }
 0x157   :  { %946 = vmatpush3.msra.mxu1 %v27_v6 }
 0x158   :  { %v127_v19 = vsub.f32 %v125_v18, %v126_v17  ;;  %980 = vmatprep.subr.mxu1 %v1043_v2 }
 0x159   :  { %v154_v38 = vpop.xlane.xlu0 %153 }
 0x15a   :  { %v129_v20 = vadd.f32 1e-05, %v127_v19 }
 0x15c   :  { %1013 = vrsqrt.f32 %v129_v20 }
 0x169   :  { %v1014_v22 = vpop.eup %1013 }
 0x16a   :  { %v131_v24 = vmul.f32 %v1014_v22, %v128_v21 }
 0x16c   :  { %v136_v26 = vmul.f32 %v838_v23, %v131_v24  ;;  %v430_v24 = vld [vmem:[%s1345_s3 + $0x90] sm:$0xff] }
 0x16e   :  { %v141_v27 = vadd.f32 %v839_v25, %v136_v26  ;;  %v429_v25 = vld [vmem:[%s1345_s3 + $0x88] sm:$0xff]  ;;  %v427_v26 = vld [vmem:[%s1345_s3 + $0x78] sm:$0xff] }
 0x170   :  { %v142_v28 = vmax.f32 %v141_v27, 0.0 }
 0x172   :  { %v147_v29 = vsel %vm116_vm2, %v142_v28, 0.0  ;;  %v155_v30 = vmul.f32 %v142_v28, %v142_v28 }
 0x173   :  { %148 = vadd.xlane.f32.xlu1 %v147_v29 }
 0x174   :  { %v156_v31 = vsel %vm116_vm2, %v155_v30, 0.0 }
 0x177   :  { %157 = vadd.xlane.f32.xlu1 %v156_v31 }
 0x1fc   :  { %v149_v36 = vpop.xlane.xlu1 %148 }
 0x1fd   :  { %v150_v37 = vadd.f32 %v149_v36, %v146_v35  ;;  %v849_v36 = vld [vmem:[%s1344_s2 + $0x9] ss:$0 sm:$0xff] }
 0x1ff   :  { %v160_v39 = vmul.f32 0.020833334, %v150_v37 }
 0x200   :  { %v158_v40 = vpop.xlane.xlu1 %157 }
 0x201   :  { %v159_v41 = vadd.f32 %v158_v40, %v154_v38  ;;  %v162_v42 = vmul.f32 %v160_v39, %v160_v39  ;;  %v180_v46 = vsub.f32 %v142_v28, %v160_v39  ;;  %v166_v51 = vsub.f32 %v1094_v10, %v160_v39  ;;  %v850_v38 = vld [vmem:[%s1344_s2 + $0xa] ss:$0 sm:$0xff] }
 0x203   :  { %v161_v43 = vmul.f32 0.020833334, %v159_v41  ;;  %v438_v41 = vld [vmem:[%s1345_s3 + $0xd0] sm:$0xff] }
 0x205   :  { %v163_v44 = vsub.f32 %v161_v43, %v162_v42  ;;  %v437_v42 = vld [vmem:[%s1345_s3 + $0xc8] sm:$0xff]  ;;  %v436_v43 = vld [vmem:[%s1345_s3 + $0xc0] sm:$0xff] }
 0x207   :  { %v164_v45 = vadd.f32 1e-05, %v163_v44  ;;  %v435_v44 = vld [vmem:[%s1345_s3 + $0xb8] sm:$0xff] }
 0x209   :  { %1015 = vrsqrt.f32 %v164_v45  ;;  %v434_v45 = vld [vmem:[%s1345_s3 + $0xb0] sm:$0xff] }
 0x216   :  { %v1016_v47 = vpop.eup %1015 }
 0x217   :  { %v181_v49 = vmul.f32 %v1016_v47, %v180_v46  ;;  %v167_v55 = vmul.f32 %v1016_v47, %v166_v51  ;;  %v433_v46 = vld [vmem:[%s1345_s3 + $0xa8] sm:$0xff]  ;;  %v432_v47 = vld [vmem:[%s1345_s3 + $0xa0] sm:$0xff] }
 0x219   :  { %v187_v52 = vmul.f32 %v842_v48, %v181_v49  ;;  %v173_v59 = vmul.f32 %v840_v56, %v167_v55  ;;  %v431_v48 = vld [vmem:[%s1345_s3 + $0x98] sm:$0xff]  ;;  %v851_v49 = vld [vmem:[%s1344_s2 + $0xb] ss:$0 sm:$0xff] }
 0x21b   :  { %v193_v53 = vadd.f32 %v843_v50, %v187_v52  ;;  %v179_v62 = vadd.f32 %v841_v60, %v173_v59 }
 0x21d   :  { %918 = vmatmul.mubr.msk.f32.vlgmr.msra.gmra.mxu0 %vm116_vm2, %v193_v53 }
 0x21e   :  { %921 = vmatpush3.msra.mxu0 %v24_v54  ;;  %928 = vmatprep.mubr.msk.f32.mxu0 %vm1044_vm1, %v1043_v2  ;;  %v853_v54 = vld [vmem:[%s1344_s2 + $0xc] ss:$0 sm:$0xff] }
 0x21f   :  { %922 = vmatprep.subr.mxu0 %v1043_v2 }
 0x220   :  { %923 = vmatpush3.msra.mxu0 %v23_v57 }
 0x221   :  { %924 = vmatprep.subr.mxu0 %v1043_v2 }
 0x222   :  { %925 = vmatpush3.msra.mxu0 %v22_v58 }
 0x223   :  { %926 = vmatprep.subr.mxu0 %v1043_v2 }
 0x224   :  { %927 = vmatpush3.msra.mxu0 %v21_v61 }
 0x225   :  { %929 = vmatmul.mubr.msk.f32.vlgmr.msra.gmra.mxu0 %vm143_vm3, %v179_v62  ;;  %950 = vmatprep.subr.mxu0 %v1043_v2  ;;  %v627_v62 = vld [vmem:[%s1345_s3 + $0xf0] sm:$0xff] }
 0x226   :  { %958 = vmatprep.mubr.msk.f32.mxu0 %vm1044_vm1, %v1043_v2  ;;  %951 = vmatpush3.msra.mxu0 %v430_v24  ;;  %v629_v24 = vld [vmem:[%s1345_s3 + $0x100] sm:$0xff] }
 0x227   :  { %952 = vmatprep.subr.mxu0 %v1043_v2 }
 0x228   :  { %953 = vmatpush3.msra.mxu0 %v429_v25  ;;  %v628_v25 = vld [vmem:[%s1345_s3 + $0xf8] sm:$0xff] }
 0x229   :  { %954 = vmatprep.subr.mxu0 %v1043_v2 }
 0x2dd   :  { %v263_v7 = vpop.f32.mrf.mxu0 }
 0x2df   :  { %v919_v8 = vpop.f32.mrf.mxu0 }
 0x2e5   :  { %v336_v9 = vpop.f32.mrf.mxu0 }
 0x2e6   :  { %v337_v12 = vadd.f32 %v336_v9, %v263_v7 }
 0x2e7   :  { %v930_v13 = vpop.f32.mrf.mxu0 }
 0x2e8   :  { %v345_v14 = vadd.f32 %v846_v11, %v337_v12  ;;  %v855_v13 = vld [vmem:[%s1344_s2 + $0xd] ss:$0 sm:$0xff] }
 0x2ea   :  { %v346_v15 = vmax.f32 %v345_v14, 0.0 }
 0x2ec   :  { %948 = vmatmul.mubr.msk.f32.vlgmr.msra.gmra.mxu1 %vm352_vm4, %v346_v15  ;;  %v856_v15 = vld [vmem:[%s1344_s2 + $0xe] ss:$0 sm:$0xff] }
 0x2ed   :  { %988 = vmatprep.mubr.msk.f32.mxu1 %vm1044_vm1, %v1043_v2  ;;  %981 = vmatpush3.msra.mxu1 %v627_v62 }
 0x2ee   :  { %982 = vmatprep.subr.mxu1 %v1043_v2 }
 0x2ef   :  { %983 = vmatpush3.msra.mxu1 %v626_v63 }
 0x2f0   :  { %984 = vmatprep.subr.mxu1 %v1043_v2 }
 0x2f1   :  { %985 = vmatpush3.msra.mxu1 %v625_v0 }
 0x2f2   :  { %986 = vmatprep.subr.mxu1 %v1043_v2 }
 0x2f3   :  { %987 = vmatpush3.msra.mxu1 %v624_v1 }
 0x2f4   :  { %991 = vmatprep.subr.mxu1 %v1043_v2 }
 0x3ac   :  { %v422_v17 = vpop.f32.mrf.mxu1 }
 0x3ad   :  { %v423_v18 = vadd.f32 %v847_v16, %v422_v17 }
 0x3ae   :  { %v949_v19 = vpop.f32.mrf.mxu1 }
 0x3af   :  { %v1194_v20 = vadd.f32 %v423_v18, %v1094_v10  ;;  %v428_v10 = vld [vmem:[%s1345_s3 + $0x80] sm:$0xff]  ;;  %v635_v18 = vld [vmem:[%s1345_s3 + $0x130] sm:$0xff]  ;;  %v634_v19 = vld [vmem:[%s1345_s3 + $0x128] sm:$0xff] }
 0x3b0   :  { %955 = vmatpush3.msra.mxu0 %v428_v10  ;;  %v857_v10 = vld [vmem:[%s1344_s2 + $0xf] ss:$0 sm:$0xff] }
 0x3b1   :  { %v441_v21 = vsel %vm143_vm3, %v1194_v20, 0.0  ;;  %v445_v22 = vmul.f32 %v1194_v20, %v1194_v20  ;;  %956 = vmatprep.subr.mxu0 %v1043_v2 }
 0x3b2   :  { %442 = vadd.xlane.f32.xlu0 %v441_v21  ;;  %957 = vmatpush3.msra.mxu0 %v427_v26  ;;  %v632_v21 = vld [vmem:[%s1345_s3 + $0x118] sm:$0xff] }
 0x3b3   :  { %v446_v23 = vsel %vm143_vm3, %v445_v22, 0.0  ;;  %961 = vmatprep.subr.mxu0 %v1043_v2  ;;  %v631_v22 = vld [vmem:[%s1345_s3 + $0x110] sm:$0xff] }
 0x3b4   :  { %447 = vadd.xlane.f32.xlu1 %v446_v23  ;;  %v630_v23 = vld [vmem:[%s1345_s3 + $0x108] sm:$0xff] }
 0x43b   :  { %v443_v27 = vpop.xlane.xlu0 %442 }
 0x43c   :  { %v444_v28 = vmul.f32 0.03125, %v443_v27 }
 0x43d   :  { %v448_v29 = vpop.xlane.xlu1 %447 }
 0x43e   :  { %v450_v30 = vmul.f32 %v444_v28, %v444_v28  ;;  %v449_v31 = vmul.f32 0.03125, %v448_v29  ;;  %v452_v34 = vsub.f32 %v1194_v20, %v444_v28 }
 0x440   :  { %v451_v32 = vsub.f32 %v449_v31, %v450_v30  ;;  %v859_v30 = vld [vmem:[%s1344_s2 + $0x10] ss:$0 sm:$0xff] }
 0x442   :  { %v453_v33 = vadd.f32 1e-05, %v451_v32 }
 0x444   :  { %1017 = vrsqrt.f32 %v453_v33 }
 0x451   :  { %v1018_v35 = vpop.eup %1017 }
 0x452   :  { %v455_v37 = vmul.f32 %v1018_v35, %v452_v34 }
 0x454   :  { %v460_v39 = vmul.f32 %v849_v36, %v455_v37 }
 0x456   :  { %v465_v40 = vadd.f32 %v850_v38, %v460_v39 }
 0x458   :  { %959 = vmatmul.mubr.msk.f32.vlgmr.msra.gmra.mxu0 %vm143_vm3, %v465_v40 }
 0x459   :  { %962 = vmatpush3.msra.mxu0 %v438_v41  ;;  %977 = vmatprep.mubr.msk.f32.mxu0 %vm1044_vm1, %v1043_v2 }
 0x45a   :  { %963 = vmatprep.subr.mxu0 %v1043_v2 }
 0x45b   :  { %964 = vmatpush3.msra.mxu0 %v437_v42 }
 0x45c   :  { %965 = vmatprep.subr.mxu0 %v1043_v2 }
 0x45d   :  { %966 = vmatpush3.msra.mxu0 %v436_v43 }
 0x45e   :  { %967 = vmatprep.subr.mxu0 %v1043_v2 }
 0x45f   :  { %968 = vmatpush3.msra.mxu0 %v435_v44 }
 0x460   :  { %969 = vmatprep.subr.mxu0 %v1043_v2 }
 0x461   :  { %970 = vmatpush3.msra.mxu0 %v434_v45 }
 0x462   :  { %971 = vmatprep.subr.mxu0 %v1043_v2 }
 0x463   :  { %972 = vmatpush3.msra.mxu0 %v433_v46 }
 0x464   :  { %973 = vmatprep.subr.mxu0 %v1043_v2 }
 0x465   :  { %974 = vmatpush3.msra.mxu0 %v432_v47 }
 0x466   :  { %975 = vmatprep.subr.mxu0 %v1043_v2 }
 0x467   :  { %976 = vmatpush3.msra.mxu0 %v431_v48 }
 0x518   :  { %v540_v50 = vpop.f32.mrf.mxu0 }
 0x519   :  { %v541_v51 = vadd.f32 %v851_v49, %v540_v50 }
 0x51a   :  { %v960_v52 = vpop.f32.mrf.mxu0 }
 0x51b   :  { %v544_v53 = vmax.f32 %v541_v51, 0.0 }
 0x51d   :  { %978 = vmatmul.mubr.msk.f32.vlgmr.msra.gmra.mxu0 %vm352_vm4, %v544_v53 }
 0x5dd   :  { %v619_v55 = vpop.f32.mrf.mxu0 }
 0x5de   :  { %v620_v56 = vadd.f32 %v853_v54, %v619_v55 }
 0x5df   :  { %v979_v57 = vpop.f32.mrf.mxu0 }
 0x5e0   :  { %v1266_v58 = vadd.f32 %v620_v56, %v1194_v20  ;;  %v633_v20 = vld [vmem:[%s1345_s3 + $0x120] sm:$0xff]  ;;  %s1021_s3 = scalar_lea.vmem %s829_s19, 128 }
 0x5e1   :  { %p1022_p0 = scmp.ne.s32.totalorder %s829_s19, %s1021_s3  ;;  %p1027_p2 = scmp.lt.s32.totalorder %s1021_s3, %s1021_s3 }
 0x5e2   :  { %v638_v59 = vsel %vm143_vm3, %v1266_v58, 0.0  ;;  %v642_v60 = vmul.f32 %v1266_v58, %v1266_v58 }
 0x5e3   :  { %639 = vadd.xlane.f32.xlu0 %v638_v59  ;;  %p1028_p3 = por %p1027_p2, %p1026_p1 }
 0x5e4   :  { %v643_v61 = vsel %vm143_vm3, %v642_v60, 0.0 }
 0x5e5   :  { %644 = vadd.xlane.f32.xlu1 %v643_v61  ;;  %p1029_p4 = pnand %p1028_p3, %p1022_p0 }
 0x66c   :  { %v640_v3 = vpop.xlane.xlu0 %639 }
 0x66d   :  { %v641_v4 = vmul.f32 0.03125, %v640_v3 }
 0x66e   :  { %v645_v5 = vpop.xlane.xlu1 %644 }
 0x66f   :  { %v647_v6 = vmul.f32 %v641_v4, %v641_v4  ;;  %v646_v7 = vmul.f32 0.03125, %v645_v5  ;;  %v649_v11 = vsub.f32 %v1266_v58, %v641_v4 }
 0x671   :  { %v648_v8 = vsub.f32 %v646_v7, %v647_v6 }
 0x673   :  { %v650_v9 = vadd.f32 1e-05, %v648_v8 }
 0x675   :  { %1019 = vrsqrt.f32 %v650_v9 }
 0x682   :  { %v1020_v12 = vpop.eup %1019 }
 0x683   :  { %v652_v14 = vmul.f32 %v1020_v12, %v649_v11 }
 0x685   :  { %v657_v16 = vmul.f32 %v855_v13, %v652_v14 }
 0x687   :  { %v662_v17 = vadd.f32 %v856_v15, %v657_v16 }
 0x689   :  { %989 = vmatmul.mubr.msk.f32.vlgmr.msra.gmra.mxu1 %vm143_vm3, %v662_v17 }
 0x68a   :  { %992 = vmatpush3.msra.mxu1 %v635_v18  ;;  %1007 = vmatprep.mubr.msk.f32.mxu1 %vm1044_vm1, %v1043_v2 }
 0x68b   :  { %993 = vmatprep.subr.mxu1 %v1043_v2 }
 0x68c   :  { %994 = vmatpush3.msra.mxu1 %v634_v19 }
 0x68d   :  { %995 = vmatprep.subr.mxu1 %v1043_v2 }
 0x68e   :  { %996 = vmatpush3.msra.mxu1 %v633_v20 }
 0x68f   :  { %997 = vmatprep.subr.mxu1 %v1043_v2 }
 0x690   :  { %998 = vmatpush3.msra.mxu1 %v632_v21 }
 0x691   :  { %999 = vmatprep.subr.mxu1 %v1043_v2 }
 0x692   :  { %1000 = vmatpush3.msra.mxu1 %v631_v22 }
 0x693   :  { %1001 = vmatprep.subr.mxu1 %v1043_v2 }
 0x694   :  { %1002 = vmatpush3.msra.mxu1 %v630_v23 }
 0x695   :  { %1003 = vmatprep.subr.mxu1 %v1043_v2 }
 0x696   :  { %1004 = vmatpush3.msra.mxu1 %v629_v24 }
 0x697   :  { %1005 = vmatprep.subr.mxu1 %v1043_v2 }
 0x698   :  { %1006 = vmatpush3.msra.mxu1 %v628_v25 }
 0x749   :  { %v737_v26 = vpop.f32.mrf.mxu1 }
 0x74a   :  { %v738_v27 = vadd.f32 %v857_v10, %v737_v26 }
 0x74b   :  { %v990_v28 = vpop.f32.mrf.mxu1 }
 0x74c   :  { %v741_v29 = vmax.f32 %v738_v27, 0.0 }
 0x74e   :  { %1008 = vmatmul.mubr.msk.f32.vlgmr.msra.gmra.mxu1 %vm352_vm4, %v741_v29 }
 0x80e   :  { %v816_v2 = vpop.f32.mrf.mxu1 }
 0x80f   :  { %v817_v31 = vadd.f32 %v859_v30, %v816_v2 }
 0x810   :  { %v1009_v32 = vpop.f32.mrf.mxu1 }
 0x811   :  { %v820_v33 = vadd.f32 %v817_v31, %v1266_v58 }
 0x813   :  { %821 = vst.msk [vmem:[#allocation2] sm:$0xff] %vm143_vm3, %v820_v33 }
 0x814   :  { %1032 = shalt.err (!%p1029_p4)
}
 0x815   :  { %831 = dma.vmem_to_hbm [thread:$0]  %s829_s19, 128, %s1346_s4, [#allocation3]  }
 0x816   :  { %1041 = dma.done.wait [#allocation3], 128  }
 0x817   :  { %1042 = vsyncadd [#allocation3], 4294967168 }
 0x818   :  { %835 = vsyncpa [#allocation3], 1 }

</bundles_post_ra>
